<compile_context>
chip_gen: v5e
topology: v5e:2x2
jax: 0.10.0
libtpu: 0.0.40
codegen_flags: <defaults>
</compile_context>

<pallas_src>
import functools

import jax
import jax.numpy as jnp
from jax.experimental import pallas as pl
from jax.experimental.pallas import tpu as pltpu

_LANES = 128
_SUBLANES = 8
_TARGET_BLOCK_ELEMS = 8192 * _LANES       # ~4 MiB per f32 input block
_VMEM_LIMIT_BYTES = 40 * 1024 * 1024      # blocks + intermediates, < v7x 64 MiB
_MAX_CORES = 2
_MAX_MINOR = 65536                        # pad fallback if a single row is huge
_MIN_MINOR = 8


def _round_down(x, m):
    return (x // m) * m


def _round_up(x, m):
    return -(-x // m) * m


def _num_tensorcores():
    """TensorCores per device to split the HBM stream across.

    Conservative: v5e / v6e are single-TC (an extra core axis only adds one
    duplicated clamped block plus always-on masking), so >1 is only reported
    on v7x-class parts.
    """
    try:
        kind = jax.devices()[0].device_kind.lower()
    except Exception:
        return 1
    if "v7" not in kind:
        return 1
    try:
        info = pltpu.get_tpu_info()
        for attr in ("num_cores", "core_count", "num_tensorcores",
                     "tensor_core_count"):
            val = getattr(info, attr, None)
            if isinstance(val, int) and val > 0:
                return max(1, min(int(val), _MAX_CORES))
    except Exception:
        pass
    return _MAX_CORES


def _recon_loss_kernel(dr_ref, cl_ref, out_ref, *, loss_type, valid_rows,
                       row_tile, slab_rows, steps_per_core, needs_mask):
    c = pl.program_id(0)          # core axis (size 1 on single-TC chips)
    i = pl.program_id(1)          # reduction axis ("arbitrary")

    @pl.when(i == 0)
    def _():
        out_ref[...] = jnp.zeros_like(out_ref)

    diff = dr_ref[...].astype(jnp.float32) - cl_ref[...].astype(jnp.float32)
    if loss_type == "l1":
        contrib = jnp.abs(diff)
    else:  # "l2"
        contrib = diff * diff

    groups = row_tile // slab_rows

    def _accumulate(vals):
        # Pure-VPU fold of the block into a (slab_rows, C) vreg slab; the
        # single cross-lane reduce happens once, in the wrapper.
        partial = vals.reshape(groups, slab_rows, vals.shape[-1]).sum(axis=0)
        out_ref[...] += partial[None]

    if needs_mask:
        # Only the (at most one per core) ragged / clamped block pays for the
        # iota + compare + select; every full block takes the unmasked path.
        row_start = (c * steps_per_core + i) * row_tile
        is_ragged = row_start + row_tile > valid_rows

        @pl.when(is_ragged)
        def _():
            row_ids = jax.lax.broadcasted_iota(jnp.int32, contrib.shape, 0)
            _accumulate(jnp.where(row_ids + row_start < valid_rows,
                                  contrib, 0.0))

        @pl.when(jnp.logical_not(is_ragged))
        def _():
            _accumulate(contrib)
    else:
        _accumulate(contrib)


def reconstruction_loss(dr, cl_img, loss_type="l1", *, block_rows=None):
    """Mean L1 / L2 loss between dr and cl_img (torch L1Loss / MSELoss, 'mean')."""
    if loss_type not in ("l1", "l2"):
        raise SystemExit("Error: no such type of ReconstructionLoss!")
    assert dr.shape == cl_img.shape, "dr and cl_img must have the same shape"
    if block_rows is not None:
        assert block_rows > 0 and block_rows % _SUBLANES == 0

    n_elems = dr.size
    if n_elems == 0:
        return jnp.float32(float("nan"))

    # ---- Layout: a free reshape (no HBM copy) in all common cases. ----------
    if n_elems % _LANES == 0:
        dr2 = dr.reshape(-1, _LANES)
        cl2 = cl_img.reshape(-1, _LANES)
    else:
        minor = dr.shape[-1] if dr.ndim >= 2 else 0
        if _MIN_MINOR <= minor <= _MAX_MINOR:
            # Collapse to (n // last_dim, last_dim): free for contiguous arrays;
            # the ragged grid tail is masked in-kernel.
            dr2 = dr.reshape(-1, minor)
            cl2 = cl_img.reshape(-1, minor)
        else:
            # Degenerate shapes (1-D / tiny / huge minor dim): pad the flat view
            # to a lane multiple.  Zero pads contribute 0 to both L1 and L2.
            pad = (-n_elems) % _LANES
            dr2 = jnp.pad(dr.reshape(-1), (0, pad)).reshape(-1, _LANES)
            cl2 = jnp.pad(cl_img.reshape(-1), (0, pad)).reshape(-1, _LANES)

    rows, minor = dr2.shape

    # ---- Tiling: ~4 MiB (f32) per input block, a multiple of the slab. ------
    if block_rows is None:
        block_rows_eff = max(_SUBLANES, _TARGET_BLOCK_ELEMS // minor)
    else:
        block_rows_eff = block_rows
    row_tile = min(block_rows_eff, _round_up(rows, _SUBLANES))
    row_tile = max(_SUBLANES, _round_down(row_tile, _SUBLANES))
    if row_tile >= 64:
        row_tile = _round_down(row_tile, 64)
        slab_rows = 64                      # 64 x C slab -> more add-chain ILP
    else:
        slab_rows = row_tile

    total_steps = pl.cdiv(rows, row_tile)
    last_block = total_steps - 1
    n_cores = min(_num_tensorcores(), total_steps)

    def _launch(cores):
        steps = pl.cdiv(total_steps, cores)
        needs_mask = cores * steps * row_tile > rows
        kern = functools.partial(
            _recon_loss_kernel, loss_type=loss_type, valid_rows=rows,
            row_tile=row_tile, slab_rows=slab_rows, steps_per_core=steps,
            needs_mask=needs_mask)

        def in_map(c, i):
            # Over-range grid points (odd step split) re-read the last block;
            # the kernel masks their contribution to zero.
            return (jnp.minimum(c * steps + i, last_block), 0)

        core_sem = (getattr(pltpu, "CORE_PARALLEL", "parallel")
                    if cores > 1 else "arbitrary")
        in_bytes = (dr2.size * dr2.dtype.itemsize
                    + cl2.size * cl2.dtype.itemsize)
        return pl.pallas_call(
            kern,
            out_shape=jax.ShapeDtypeStruct((cores, slab_rows, minor),
                                           jnp.float32),
            grid_spec=pltpu.PrefetchScalarGridSpec(
                num_scalar_prefetch=0,
                grid=(cores, steps),
                in_specs=[pl.BlockSpec((row_tile, minor), in_map),
                          pl.BlockSpec((row_tile, minor), in_map)],
                out_specs=pl.BlockSpec((1, slab_rows, minor),
                                       lambda c, i: (c, 0, 0)),
            ),
            compiler_params=pltpu.CompilerParams(
                dimension_semantics=(core_sem, "arbitrary"),
                vmem_limit_bytes=_VMEM_LIMIT_BYTES,
            ),
            cost_estimate=pl.CostEstimate(
                flops=3 * n_elems, transcendentals=0,
                bytes_accessed=in_bytes + cores * slab_rows * minor * 4),
        )(dr2, cl2)

    if n_cores > 1:
        try:
            partials = _launch(n_cores)
        except Exception:
            # Safe fallback if the explicit TensorCore split is unsupported.
            partials = _launch(1)
    else:
        partials = _launch(1)

    total = jnp.sum(partials, dtype=jnp.float32)
    return (total / n_elems).astype(jnp.float32)


def _check(name, dr, cl_img, loss_type, **kw):
    got = jax.block_until_ready(reconstruction_loss(dr, cl_img, loss_type, **kw))
    if loss_type == "l1":
        ref = jnp.mean(jnp.abs(dr - cl_img))
    else:
        ref = jnp.mean((dr - cl_img) ** 2)
    assert jnp.allclose(got, ref, rtol=1e-5, atol=1e-6), (name, got, ref)


if __name__ == "__main__":
    key = jax.random.PRNGKey(0)

    # T1: primary small NCHW shapes (single block, both loss types).
    k1, k2, key = (*jax.random.split(key, 2), key)
    dr = jax.random.normal(k1, (2, 4, 16, 16), dtype=jnp.float32)
    cl = jax.random.normal(k2, (2, 4, 16, 16), dtype=jnp.float32)
    _check("t1_l1", dr, cl, "l1")
    _check("t1_l2", dr, cl, "l2")

    # T2: odd sizes -> exercises the copy-free (rows, last_dim) layout + mask.
    k1, k2, key = (*jax.random.split(key, 2), key)
    dr = jax.random.normal(k1, (2, 3, 17, 19), dtype=jnp.float32)
    cl = jax.random.normal(k2, (2, 3, 17, 19), dtype=jnp.float32)
    _check("t2_l1", dr, cl, "l1")
    _check("t2_l2", dr, cl, "l2")

    # T3: ragged last grid block + in-kernel masking (block override).
    k1, k2, key = (*jax.random.split(key, 2), key)
    dr = jax.random.normal(k1, (2, 4, 24, 16), dtype=jnp.float32)
    cl = jax.random.normal(k2, (2, 4, 24, 16), dtype=jnp.float32)
    _check("t3_l2", dr, cl, "l2", block_rows=16)

    # T4: multi-step accumulation (and clamped blocks if a core split engages).
    k1, k2, key = (*jax.random.split(key, 2), key)
    dr = jax.random.normal(k1, (2, 4, 36, 32), dtype=jnp.float32)
    cl = jax.random.normal(k2, (2, 4, 36, 32), dtype=jnp.float32)
    _check("t4_l1", dr, cl, "l1", block_rows=8)

    # T5: 1-D unaligned input -> degenerate padding fallback path.
    k1, k2, key = (*jax.random.split(key, 2), key)
    dr = jax.random.normal(k1, (1000,), dtype=jnp.float32)
    cl = jax.random.normal(k2, (1000,), dtype=jnp.float32)
    _check("t5_l2", dr, cl, "l2")

    print("KERNEL_OK")
</pallas_src>

<mosaic_0001>
module attributes {stable_mosaic.version = 11 : i64} {
  func.func @_recon_loss_kernel(%arg0: i32, %arg1: i32, %arg2: memref<16x128xf32, #tpu.memory_space<vmem>>, %arg3: memref<16x128xf32, #tpu.memory_space<vmem>>, %arg4: memref<1x16x128xf32, #tpu.memory_space<vmem>>) attributes {dimension_semantics = [#tpu.dimension_semantics<arbitrary>, #tpu.dimension_semantics<arbitrary>], iteration_bounds = array<i64: 1, 1>, scalar_prefetch = 0 : i64, scratch_operands = 0 : i64, tpu.core_type = #tpu.core_type<tc>, window_params = [{transform_indices = @transform_0, window_bounds = array<i64: 16, 128>}, {transform_indices = @transform_1, window_bounds = array<i64: 16, 128>}, {transform_indices = @transform_2, window_bounds = array<i64: 1, 16, 128>}]} {
    %c0_i32 = arith.constant 0 : i32
    %0 = arith.cmpi eq, %arg1, %c0_i32 : i32
    %1 = arith.extui %0 : i1 to i32
    %c0_i32_0 = arith.constant 0 : i32
    %2 = arith.cmpi ne, %1, %c0_i32_0 : i32
    scf.if %2 {
      %cst_10 = arith.constant 0.000000e+00 : f32
      %13 = vector.broadcast %cst_10 : f32 to vector<1x16x128xf32>
      %c0_11 = arith.constant 0 : index
      %c0_12 = arith.constant 0 : index
      %c0_13 = arith.constant 0 : index
      %14 = vector.load %arg4[%c0_11, %c0_12, %c0_13] : memref<1x16x128xf32, #tpu.memory_space<vmem>>, vector<1x16x128xf32>
      tpu.vector_store %arg4[%c0_11, %c0_12, %c0_13], %13 {strides = array<i32>} : memref<1x16x128xf32, #tpu.memory_space<vmem>>, vector<1x16x128xf32>,
    } else {
    }
    %c0 = arith.constant 0 : index
    %c0_1 = arith.constant 0 : index
    %3 = vector.load %arg2[%c0, %c0_1] : memref<16x128xf32, #tpu.memory_space<vmem>>, vector<16x128xf32>
    %c0_2 = arith.constant 0 : index
    %c0_3 = arith.constant 0 : index
    %4 = vector.load %arg3[%c0_2, %c0_3] : memref<16x128xf32, #tpu.memory_space<vmem>>, vector<16x128xf32>
    %5 = arith.subf %3, %4 : vector<16x128xf32>
    %6 = math.absf %5 : vector<16x128xf32>
    %7 = vector.shape_cast %6 : vector<16x128xf32> to vector<1x16x128xf32>
    %cst = arith.constant dense<0.000000e+00> : vector<16x128xf32>
    %8 = vector.multi_reduction <add>, %7, %cst [0] : vector<1x16x128xf32> to vector<16x128xf32>
    %c0_4 = arith.constant 0 : index
    %c0_5 = arith.constant 0 : index
    %c0_6 = arith.constant 0 : index
    %9 = vector.load %arg4[%c0_4, %c0_5, %c0_6] : memref<1x16x128xf32, #tpu.memory_space<vmem>>, vector<1x16x128xf32>
    %10 = vector.shape_cast %8 : vector<16x128xf32> to vector<1x16x128xf32>
    %11 = arith.addf %9, %10 : vector<1x16x128xf32>
    %c0_7 = arith.constant 0 : index
    %c0_8 = arith.constant 0 : index
    %c0_9 = arith.constant 0 : index
    %12 = vector.load %arg4[%c0_7, %c0_8, %c0_9] : memref<1x16x128xf32, #tpu.memory_space<vmem>>, vector<1x16x128xf32>
    tpu.vector_store %arg4[%c0_7, %c0_8, %c0_9], %11 {strides = array<i32>} : memref<1x16x128xf32, #tpu.memory_space<vmem>>, vector<1x16x128xf32>,
    return
  }
  func.func @transform_0(%arg0: i32, %arg1: i32) -> (i32, i32) {
    %c1_i32 = arith.constant 1 : i32
    %0 = arith.muli %arg0, %c1_i32 : i32
    %1 = arith.addi %0, %arg1 : i32
    %c0_i32 = arith.constant 0 : i32
    %2 = arith.minsi %1, %c0_i32 : i32
    %c0_i32_0 = arith.constant 0 : i32
    %c0_i32_1 = arith.constant 0 : i32
    return %2, %c0_i32_0 : i32, i32
  }
  func.func @transform_1(%arg0: i32, %arg1: i32) -> (i32, i32) {
    %c1_i32 = arith.constant 1 : i32
    %0 = arith.muli %arg0, %c1_i32 : i32
    %1 = arith.addi %0, %arg1 : i32
    %c0_i32 = arith.constant 0 : i32
    %2 = arith.minsi %1, %c0_i32 : i32
    %c0_i32_0 = arith.constant 0 : i32
    %c0_i32_1 = arith.constant 0 : i32
    return %2, %c0_i32_0 : i32, i32
  }
  func.func @transform_2(%arg0: i32, %arg1: i32) -> (i32, i32, i32) {
    %c0_i32 = arith.constant 0 : i32
    %c0_i32_0 = arith.constant 0 : i32
    %c0_i32_1 = arith.constant 0 : i32
    return %arg0, %c0_i32, %c0_i32_0 : i32, i32, i32
  }
}

</mosaic_0001>

<bundles_post_ra>
// kernel: tpu_custom_call.1
= control target key start
LH: loop header
LB: loop body
LE: loop exit
PB: predicated region body
PF: predicated region fallthrough
CT: control target
= control target key end

     0   :  { %7 = vsyncpa [#allocation3], 0  ;;  %s232_s0 = inlined_call_operand.hbm [shape: f32[16,128], index: 0, kind: input, shape index: {}]   ;;  %s233_s1 = inlined_call_operand.hbm [shape: f32[16,128], index: 1, kind: input, shape index: {}]   ;;  %s234_s2 = inlined_call_operand.hbm [shape: f32[1,16,128], index: 2, kind: output, shape index: {}]  }
   0x1   :  { %8 = vsyncpa [#allocation6], 0 }
   0x2   :  { %9 = vsyncpa [#allocation4], 0  ;;  %s20_s11 = sshll.u32 %s232_s0, 4  ;;  %s194_s12 = smov [#allocation2]   ;;  %s21_s11 = int_to_ptr.hbm [resolvable:$true] %s20_s11 }
   0x3   :  { %s22_s13 = sshll.u32 %s194_s12, 4  ;;  %s39_s16 = sshll.u32 %s233_s1, 4  ;;  %s23_s13 = int_to_ptr.vmem [resolvable:$true] %s22_s13  ;;  %s40_s16 = int_to_ptr.hbm [resolvable:$true] %s39_s16 }
   0x4   :  { %s195_s17 = smov 128   ;;  %s196_s18 = smov 8  }
   0x5   :  { %28 = dma.hbm_to_vmem [thread:$0]  %s21_s11, 256, %s23_s13, [#allocation3], %s195_s17, %s195_s17, %s196_s18  }
   0x6   :  { %s197_s19 = smov [#allocation5]  }
   0x7   :  { %s41_s20 = sshll.u32 %s197_s19, 4  ;;  %s42_s20 = int_to_ptr.vmem [resolvable:$true] %s41_s20 }
   0x8   :  { %47 = dma.hbm_to_vmem [thread:$0]  %s40_s16, 256, %s42_s20, [#allocation6], %s195_s17, %s195_s17, %s196_s18  }
   0x9   :  { %188 = dma.done.wait [#allocation3], 256  }
   0xa   :  { %189 = vsyncadd [#allocation3], 4294967040 }
   0xb   :  { %190 = dma.done.wait [#allocation6], 256  }
   0xc   :  { %191 = vsyncadd [#allocation6], 4294967040  ;;  %v70_v0 = vld [vmem:[#allocation2] sm:$0xff]  ;;  %v72_v1 = vld [vmem:[#allocation5] sm:$0xff]  ;;  %s198_s0 = smov [#allocation7]   ;;  %s92_s23 = sshll.u32 %s234_s2, 4  ;;  %s93_s23 = int_to_ptr.hbm [resolvable:$true] %s92_s23 }
   0xd   :  { %v71_v2 = vld [vmem:[#allocation2 + $0x8] sm:$0xff]  ;;  %v74_v3 = vsub.f32 %v70_v0, %v72_v1  ;;  %v73_v4 = vld [vmem:[#allocation5 + $0x8] sm:$0xff]  ;;  %s90_s1 = sshll.u32 %s198_s0, 4  ;;  %s91_s1 = int_to_ptr.vmem [resolvable:$true] %s90_s1 }
   0xe   :  { %v75_v5 = vsub.f32 %v71_v2, %v73_v4 }
   0xf   :  { %v76_v6 = vand.u32 2147483647, %v74_v3 }
  0x10   :  { %v77_v7 = vand.u32 2147483647, %v75_v5 }
  0x11   :  { %84 = vst [vmem:[#allocation7] sm:$0xff] %v76_v6 }
  0x12   :  { %85 = vst [vmem:[#allocation7 + $0x8] sm:$0xff] %v77_v7 }
  0x13   :  { %98 = dma.vmem_to_hbm [thread:$0]  %s91_s1, 256, %s93_s23, [#allocation4], %s195_s17, %s195_s17, %s196_s18  }
  0x14   :  { %192 = dma.done.wait [#allocation4], 256  }
  0x15   :  { %193 = vsyncadd [#allocation4], 4294967040 }
  0x16   :  { %103 = vsyncpa [#allocation3], 1 }
  0x17   :  { %104 = vsyncpa [#allocation6], 1 }
  0x18   :  { %105 = vsyncpa [#allocation4], 1 }

</bundles_post_ra>
